<compile_context>
chip_gen: v7x
topology: tpu7x:2x2x1
jax: 0.10.0
libtpu: 0.0.40
codegen_flags: <defaults>
</compile_context>

<pallas_src>
import jax
import jax.numpy as jnp
from jax.experimental import pallas as pl
from jax.experimental.pallas import tpu as pltpu

_LANE = 128
_MAX_TILE_N = 1024  # f32 h1 tile = 128 * TILE_N * 4 B = 512 KiB -> safe on v7x VMEM


def rbfnet_kernel(x_ref, w1_ref, b1_ref, w2_ref, b2_ref, w3_ref, b3_ref, o_ref):
    x = x_ref[...]                                     # [2, T]   (batch on lanes)
    w1 = w1_ref[...]                                   # [128, 2]

    # Layer 1: Linear(2, 128) + ReLU -- two broadcast FMAs on the VPU
    # (a K=2 systolic pass would leave the MXU ~98% idle).
    h1 = w1[:, 0:1] * x[0:1, :] + w1[:, 1:2] * x[1:2, :] + b1_ref[...]
    h1 = jnp.maximum(h1, 0.0)                          # [128, T]

    # Layer 2: Linear(128, 32) + Tanh -- the only real MXU work (K=128,
    # lane-dense output tile).
    h2 = jnp.dot(w2_ref[...], h1, preferred_element_type=jnp.float32)
    h2 = jnp.tanh(h2 + b2_ref[...])                    # [32, T]

    # Layer 3: Linear(32, 1) -- VPU multiply + cross-sublane reduce instead of
    # a 1-row MXU matmul; bias is an SMEM scalar.
    out = jnp.sum(h2 * w3_ref[...], axis=0, keepdims=True) + b3_ref[0, 0]
    o_ref[...] = out.astype(o_ref.dtype)               # [1, T] lane-dense store


def rbfnet_forward(x, params):
    """x: [N, 2] float32 -> [N, 1] float32 (fused MLP in one Pallas kernel)."""
    w1, b1, w2, b2, w3, b3 = params
    n = x.shape[0]

    # Lane-aligned batch tile; pad N up to a whole number of tiles.
    if n <= _MAX_TILE_N:
        tile_n = max(_LANE, pl.cdiv(n, _LANE) * _LANE)
    else:
        tile_n = _MAX_TILE_N
    n_pad = pl.cdiv(n, tile_n) * tile_n
    grid = (n_pad // tile_n,)

    # Transposed ("batch on lanes") input; padded columns are sliced off below.
    x_t = jnp.zeros((2, n_pad), jnp.float32).at[:, :n].set(x.T)

    # Weights/biases: full-array blocks, constant index_map -> VMEM-resident.
    resident = lambda a: pl.BlockSpec(a.shape, lambda i: (0,) * a.ndim)

    flops = 2 * n_pad * (2 * 128 + 128 * 32 + 32)
    bytes_accessed = 4 * (x_t.size + n_pad + w1.size + b1.size
                          + w2.size + b2.size + w3.size + b3.size)
    cost = pl.CostEstimate(flops=flops, transcendentals=n_pad * 32,
                           bytes_accessed=bytes_accessed)

    out_t = pl.pallas_call(
        rbfnet_kernel,
        out_shape=jax.ShapeDtypeStruct((1, n_pad), jnp.float32),
        grid=grid,
        in_specs=[
            pl.BlockSpec((2, tile_n), lambda i: (0, i)),         # x tile
            resident(w1), resident(b1),
            resident(w2), resident(b2),
            resident(w3),
            pl.BlockSpec(memory_space=pltpu.MemorySpace.SMEM),   # b3 scalar
        ],
        out_specs=pl.BlockSpec((1, tile_n), lambda i: (0, i)),
        compiler_params=pltpu.CompilerParams(
            dimension_semantics=("parallel",)),
        cost_estimate=cost,
    )(x_t, w1, b1, w2, b2, w3, b3)

    return out_t[:, :n].T


def init_params(key):
    """Deterministic init matching the PyTorch module's parameter shapes.

    Weights are kept in PyTorch [out, in] layout (used directly by the
    transposed kernel), except w3 which is stored as a [32, 1] column;
    biases are stored as [out, 1] columns. PyTorch-style U(-1/sqrt(in), ...).
    """
    keys = jax.random.split(key, 6)
    dims = [(2, 128), (128, 32), (32, 1)]
    params = []
    for i, (fin, fout) in enumerate(dims):
        bound = 1.0 / (fin ** 0.5)
        w = jax.random.uniform(keys[2 * i], (fout, fin), jnp.float32,
                               minval=-bound, maxval=bound)
        b = jax.random.uniform(keys[2 * i + 1], (fout, 1), jnp.float32,
                               minval=-bound, maxval=bound)
        params.extend([w, b])
    w1, b1, w2, b2, w3, b3 = params
    return (w1, b1, w2, b2, w3.T, b3)  # w3 as [32, 1], b3 as [1, 1]


def reference_forward(x, params):
    w1, b1, w2, b2, w3, b3 = params
    hi = jax.lax.Precision.HIGHEST
    h1 = jnp.maximum(jnp.dot(x, w1.T, precision=hi) + b1.T, 0.0)   # [N, 128]
    h2 = jnp.tanh(jnp.dot(h1, w2.T, precision=hi) + b2.T)          # [N, 32]
    return jnp.dot(h2, w3, precision=hi) + b3                      # [N, 1]


if __name__ == "__main__":
    key = jax.random.PRNGKey(0)
    k_x, k_p = jax.random.split(key)
    params = init_params(k_p)

    # Small batch (single padded lane-tile path).
    n = 8
    x = jax.random.normal(k_x, (n, 2), jnp.float32)
    out = jax.block_until_ready(rbfnet_forward(x, params))
    ref = reference_forward(x, params)
    assert out.shape == (n, 1)
    assert jnp.allclose(out, ref, atol=2e-5, rtol=2e-5)

    # Larger batch (multi-tile pipelined grid path, resident weights).
    n2 = 1536
    x2 = jax.random.normal(k_x, (n2, 2), jnp.float32)
    out2 = jax.block_until_ready(rbfnet_forward(x2, params))
    ref2 = reference_forward(x2, params)
    assert out2.shape == (n2, 1)
    assert jnp.allclose(out2, ref2, atol=2e-5, rtol=2e-5)

    print("KERNEL_OK")
</pallas_src>

<mosaic_0001>
module attributes {stable_mosaic.version = 11 : i64} {
  func.func @rbfnet_kernel(%arg0: i32, %arg1: memref<2x128xf32, #tpu.memory_space<vmem>>, %arg2: memref<128x2xf32, #tpu.memory_space<vmem>>, %arg3: memref<128x1xf32, #tpu.memory_space<vmem>>, %arg4: memref<32x128xf32, #tpu.memory_space<vmem>>, %arg5: memref<32x1xf32, #tpu.memory_space<vmem>>, %arg6: memref<32x1xf32, #tpu.memory_space<vmem>>, %arg7: memref<1x1xf32, #tpu.memory_space<smem>>, %arg8: memref<1x128xf32, #tpu.memory_space<vmem>>) attributes {dimension_semantics = [#tpu.dimension_semantics<parallel>], iteration_bounds = array<i64: 1>, scalar_prefetch = 0 : i64, scratch_operands = 0 : i64, tpu.core_type = #tpu.core_type<tc>, window_params = [{transform_indices = @transform_0, window_bounds = array<i64: 2, 128>}, {pipeline_mode = #tpu.pipeline_mode<synchronous>, transform_indices = @transform_1, window_bounds = array<i64: 128, 2>}, {pipeline_mode = #tpu.pipeline_mode<synchronous>, transform_indices = @transform_2, window_bounds = array<i64: 128, 1>}, {pipeline_mode = #tpu.pipeline_mode<synchronous>, transform_indices = @transform_3, window_bounds = array<i64: 32, 128>}, {pipeline_mode = #tpu.pipeline_mode<synchronous>, transform_indices = @transform_4, window_bounds = array<i64: 32, 1>}, {pipeline_mode = #tpu.pipeline_mode<synchronous>, transform_indices = @transform_5, window_bounds = array<i64: 32, 1>}, {transform_indices = @transform_6, window_bounds = array<i64: 1, 1>}, {transform_indices = @transform_7, window_bounds = array<i64: 1, 128>}]} {
    %c0 = arith.constant 0 : index
    %c0_0 = arith.constant 0 : index
    %0 = vector.load %arg1[%c0, %c0_0] : memref<2x128xf32, #tpu.memory_space<vmem>>, vector<2x128xf32>
    %c0_1 = arith.constant 0 : index
    %c0_2 = arith.constant 0 : index
    %1 = vector.load %arg2[%c0_1, %c0_2] : memref<128x2xf32, #tpu.memory_space<vmem>>, vector<128x2xf32>
    %2 = vector.extract_strided_slice %1 {offsets = [0, 0], sizes = [128, 1], strides = [1, 1]} : vector<128x2xf32> to vector<128x1xf32>
    %3 = vector.extract_strided_slice %0 {offsets = [0, 0], sizes = [1, 128], strides = [1, 1]} : vector<2x128xf32> to vector<1x128xf32>
    %4 = vector.broadcast %2 : vector<128x1xf32> to vector<128x128xf32>
    %5 = vector.broadcast %3 : vector<1x128xf32> to vector<128x128xf32>
    %6 = arith.mulf %4, %5 : vector<128x128xf32>
    %7 = vector.extract_strided_slice %1 {offsets = [0, 1], sizes = [128, 1], strides = [1, 1]} : vector<128x2xf32> to vector<128x1xf32>
    %8 = vector.extract_strided_slice %0 {offsets = [1, 0], sizes = [1, 128], strides = [1, 1]} : vector<2x128xf32> to vector<1x128xf32>
    %9 = vector.broadcast %7 : vector<128x1xf32> to vector<128x128xf32>
    %10 = vector.broadcast %8 : vector<1x128xf32> to vector<128x128xf32>
    %11 = arith.mulf %9, %10 : vector<128x128xf32>
    %12 = arith.addf %6, %11 : vector<128x128xf32>
    %c0_3 = arith.constant 0 : index
    %c0_4 = arith.constant 0 : index
    %13 = vector.load %arg3[%c0_3, %c0_4] : memref<128x1xf32, #tpu.memory_space<vmem>>, vector<128x1xf32>
    %14 = vector.broadcast %13 : vector<128x1xf32> to vector<128x128xf32>
    %15 = arith.addf %12, %14 : vector<128x128xf32>
    %cst = arith.constant 0.000000e+00 : f32
    %16 = vector.broadcast %cst : f32 to vector<128x128xf32>
    %17 = arith.maximumf %15, %16 : vector<128x128xf32>
    %c0_5 = arith.constant 0 : index
    %c0_6 = arith.constant 0 : index
    %18 = vector.load %arg4[%c0_5, %c0_6] : memref<32x128xf32, #tpu.memory_space<vmem>>, vector<32x128xf32>
    %cst_7 = arith.constant dense<0.000000e+00> : vector<32x128xf32>
    %19 = tpu.matmul %18, %17, %cst_7 {dimension_numbers = #tpu.dot_dimension_numbers<[1], [0], [0], [1], [0, 0, 1, 1], [], []>} : vector<32x128xf32>, vector<128x128xf32>, vector<32x128xf32> -> vector<32x128xf32>
    %c0_8 = arith.constant 0 : index
    %c0_9 = arith.constant 0 : index
    %20 = vector.load %arg5[%c0_8, %c0_9] : memref<32x1xf32, #tpu.memory_space<vmem>>, vector<32x1xf32>
    %21 = vector.broadcast %20 : vector<32x1xf32> to vector<32x128xf32>
    %22 = arith.addf %19, %21 : vector<32x128xf32>
    %23 = math.tanh %22 : vector<32x128xf32>
    %c0_10 = arith.constant 0 : index
    %c0_11 = arith.constant 0 : index
    %24 = vector.load %arg6[%c0_10, %c0_11] : memref<32x1xf32, #tpu.memory_space<vmem>>, vector<32x1xf32>
    %25 = vector.broadcast %24 : vector<32x1xf32> to vector<32x128xf32>
    %26 = arith.mulf %23, %25 : vector<32x128xf32>
    %cst_12 = arith.constant dense<0.000000e+00> : vector<128xf32>
    %27 = vector.multi_reduction <add>, %26, %cst_12 [0] : vector<32x128xf32> to vector<128xf32>
    %28 = vector.shape_cast %27 : vector<128xf32> to vector<1x128xf32>
    %c0_13 = arith.constant 0 : index
    %c0_14 = arith.constant 0 : index
    %29 = memref.load %arg7[%c0_13, %c0_14] : memref<1x1xf32, #tpu.memory_space<smem>>
    %30 = vector.broadcast %29 : f32 to vector<1x128xf32>
    %31 = arith.addf %28, %30 : vector<1x128xf32>
    %c0_15 = arith.constant 0 : index
    %c0_16 = arith.constant 0 : index
    %32 = vector.load %arg8[%c0_15, %c0_16] : memref<1x128xf32, #tpu.memory_space<vmem>>, vector<1x128xf32>
    tpu.vector_store %arg8[%c0_15, %c0_16], %31 {strides = array<i32>} : memref<1x128xf32, #tpu.memory_space<vmem>>, vector<1x128xf32>,
    return
  }
  func.func @transform_0(%arg0: i32) -> (i32, i32) {
    %c0_i32 = arith.constant 0 : i32
    %c0_i32_0 = arith.constant 0 : i32
    return %c0_i32, %arg0 : i32, i32
  }
  func.func @transform_1(%arg0: i32) -> (i32, i32) {
    %c0_i32 = arith.constant 0 : i32
    %c0_i32_0 = arith.constant 0 : i32
    %c0_i32_1 = arith.constant 0 : i32
    return %c0_i32, %c0_i32_0 : i32, i32
  }
  func.func @transform_2(%arg0: i32) -> (i32, i32) {
    %c0_i32 = arith.constant 0 : i32
    %c0_i32_0 = arith.constant 0 : i32
    %c0_i32_1 = arith.constant 0 : i32
    return %c0_i32, %c0_i32_0 : i32, i32
  }
  func.func @transform_3(%arg0: i32) -> (i32, i32) {
    %c0_i32 = arith.constant 0 : i32
    %c0_i32_0 = arith.constant 0 : i32
    %c0_i32_1 = arith.constant 0 : i32
    return %c0_i32, %c0_i32_0 : i32, i32
  }
  func.func @transform_4(%arg0: i32) -> (i32, i32) {
    %c0_i32 = arith.constant 0 : i32
    %c0_i32_0 = arith.constant 0 : i32
    %c0_i32_1 = arith.constant 0 : i32
    return %c0_i32, %c0_i32_0 : i32, i32
  }
  func.func @transform_5(%arg0: i32) -> (i32, i32) {
    %c0_i32 = arith.constant 0 : i32
    %c0_i32_0 = arith.constant 0 : i32
    %c0_i32_1 = arith.constant 0 : i32
    return %c0_i32, %c0_i32_0 : i32, i32
  }
  func.func @transform_6(%arg0: i32) -> (i32, i32) {
    %c0_i32 = arith.constant 0 : i32
    %c0_i32_0 = arith.constant 0 : i32
    %c0_i32_1 = arith.constant 0 : i32
    return %c0_i32, %c0_i32_0 : i32, i32
  }
  func.func @transform_7(%arg0: i32) -> (i32, i32) {
    %c0_i32 = arith.constant 0 : i32
    %c0_i32_0 = arith.constant 0 : i32
    return %c0_i32, %arg0 : i32, i32
  }
}

</mosaic_0001>

<bundles_post_ra>
// kernel: tpu_custom_call.1
= control target key start
LH: loop header
LB: loop body
LE: loop exit
PB: predicated region body
PF: predicated region fallthrough
CT: control target
= control target key end

     0   :  { %v704_v2 = vmov 1   ;;  %v705_v7 = vmov 0   ;;  %s977_s0 = inlined_call_operand.vmem [shape: f32[2,128], index: 0, kind: input, shape index: {}]   ;;  %s978_s1 = inlined_call_operand.vmem [shape: f32[128,2], index: 1, kind: input, shape index: {}]   ;;  %s979_s2 = inlined_call_operand.vmem [shape: f32[128,1], index: 2, kind: input, shape index: {}]   ;;  %s980_s3 = inlined_call_operand.vmem [shape: f32[32,128], index: 3, kind: input, shape index: {}]   ;;  %s981_s4 = inlined_call_operand.vmem [shape: f32[32,1], index: 4, kind: input, shape index: {}]   ;;  %s982_s5 = inlined_call_operand.vmem [shape: f32[32,1], index: 5, kind: input, shape index: {}]   ;;  %s983_s6 = inlined_call_operand.<no memory space> [shape: f32[1,1], index: 6, kind: input, shape index: {}]   ;;  %s984_s7 = inlined_call_operand.hbm [shape: f32[1,128], index: 7, kind: output, shape index: {}]  }
   0x1   :  { %v31_v0 = vld [vmem:[%s978_s1 + $0x10] sm:$0xff]  ;;  %v29_v1 = vld [vmem:[%s978_s1] sm:$0xff]  ;;  %656 = vset.pattern.permute.xlu0 %v704_v2  ;;  %654 = vset.pattern.permute.xlu1 %v704_v2  ;;  %v30_v4 = vld [vmem:[%s978_s1 + $0x8] sm:$0xff] }
   0x2   :  { %154 = vperm.xlu0 %656, %v31_v0   ;;  %146 = vperm.xlu1 %654, %v29_v1   ;;  %v33_v3 = vld [vmem:[%s978_s1 + $0x20] sm:$0xff]  ;;  %v35_v5 = vld [vmem:[%s978_s1 + $0x30] sm:$0xff]  ;;  %v32_v6 = vld [vmem:[%s978_s1 + $0x18] sm:$0xff] }
   0x3   :  { %v37_v8 = vld [vmem:[%s978_s1 + $0x40] sm:$0xff] }
   0x6   :  { %162 = vperm.xlu0 %656, %v33_v3   ;;  %150 = vperm.xlu1 %654, %v30_v4  }
   0xa   :  { %170 = vperm.xlu0 %656, %v35_v5   ;;  %655 = vset.pattern.permute.xlu1 %v705_v7 }
   0xb   :  { %62 = vperm.xlu1 %655, %v32_v6  }
   0xc   :  { %13 = vsyncpa [#allocation4], 0  ;;  %v39_v9 = vld [vmem:[%s978_s1 + $0x50] sm:$0xff]  ;;  %v245_v10 = vld [vmem:[%s979_s2] sm:$0xff]  ;;  %v125_v52 = vlaneseq  ;;  %s706_s18 = smov [#allocation3]  }
   0xd   :  { %v781_v11 = vld [vmem:[%s978_s1 + $0x60] sm:$0xff]  ;;  %v788_v12 = vld [vmem:[%s978_s1 + $0x70] sm:$0xff]  ;;  %v34_v13 = vld [vmem:[%s978_s1 + $0x28] sm:$0xff]  ;;  %s537_s19 = sshll.u32 %s706_s18, 4  ;;  %s538_s19 = int_to_ptr.vmem [resolvable:$true] %s537_s19 }
   0xe   :  { %178 = vperm.xlu0 %656, %v37_v8   ;;  %v247_v14 = vld [vmem:[%s979_s2 + $0x10] sm:$0xff]  ;;  %v246_v15 = vld [vmem:[%s979_s2 + $0x8] sm:$0xff]  ;;  %v248_v16 = vld [vmem:[%s979_s2 + $0x18] sm:$0xff]  ;;  %v126_v56 = vshrl.u32 %v125_v52, 7  ;;  %s680_s20 = scalar_lea.vmem %s538_s19, 16  ;;  %s684_s21 = scalar_lea.vmem %s538_s19, 32 }
   0xf   :  { %657 = vset.pattern.permute.xlu1 %v704_v2  ;;  %v36_v17 = vld [vmem:[%s978_s1 + $0x38] sm:$0xff]  ;;  %v250_v18 = vld [vmem:[%s979_s2 + $0x28] sm:$0xff]  ;;  %v249_v20 = vld [vmem:[%s979_s2 + $0x20] sm:$0xff]  ;;  %p681_p0 = scmp.ne.s32.totalorder %s538_s19, %s680_s20  ;;  %p685_p1 = scmp.lt.s32.totalorder %s538_s19, %s538_s19 }
  0x10   :  { %158 = vperm.xlu1 %657, %v32_v6   ;;  %v252_v19 = vld [vmem:[%s979_s2 + $0x38] sm:$0xff]  ;;  %v254_v21 = vld [vmem:[%s979_s2 + $0x48] sm:$0xff]  ;;  %v377_v25 = vld [vmem:[%s981_s4] sm:$0xff]  ;;  %v211_v59 = vsub.s32 1, %v126_v56  ;;  %v127_v60 = vsub.s32 0, %v126_v56  ;;  %p686_p2 = scmp.lt.s32.totalorder %s684_s21, %s680_s20 }
  0x11   :  { %v256_v22 = vld [vmem:[%s979_s2 + $0x58] sm:$0xff]  ;;  %v38_v23 = vld [vmem:[%s978_s1 + $0x48] sm:$0xff]  ;;  %v251_v26 = vld [vmem:[%s979_s2 + $0x30] sm:$0xff] }
  0x12   :  { %186 = vperm.xlu0 %656, %v39_v9   ;;  %v258_v24 = vld [vmem:[%s979_s2 + $0x68] sm:$0xff]  ;;  %v379_v27 = vld [vmem:[%s981_s4 + $0x10] sm:$0xff]  ;;  %v490_v28 = vld [vmem:[%s982_s5] sm:$0xff]  ;;  %p687_p3 = por %p686_p2, %p685_p1 }
  0x13   :  { %v40_v29 = vld [vmem:[%s978_s1 + $0x58] sm:$0xff]  ;;  %v492_v30 = vld [vmem:[%s982_s5 + $0x10] sm:$0xff]  ;;  %v253_v31 = vld [vmem:[%s979_s2 + $0x40] sm:$0xff] }
  0x14   :  { %658 = vset.pattern.permute.xlu1 %v705_v7  ;;  %v42_v32 = vld [vmem:[%s978_s1 + $0x68] sm:$0xff]  ;;  %v255_v33 = vld [vmem:[%s979_s2 + $0x50] sm:$0xff]  ;;  %v44_v34 = vld [vmem:[%s978_s1 + $0x78] sm:$0xff]  ;;  %p688_p4 = pnand %p687_p3, %p681_p0 }
  0x15   :  { %263 = vperm.xlu1 %658, %v245_v10   ;;  %v257_v35 = vld [vmem:[%s979_s2 + $0x60] sm:$0xff]  ;;  %v259_v38 = vld [vmem:[%s979_s2 + $0x70] sm:$0xff]  ;;  %v260_v41 = vld [vmem:[%s979_s2 + $0x78] sm:$0xff] }
  0x16   :  { %194 = vperm.xlu0 %656, %v781_v11   ;;  %v378_v44 = vld [vmem:[%s981_s4 + $0x8] sm:$0xff]  ;;  %v380_v46 = vld [vmem:[%s981_s4 + $0x18] sm:$0xff]  ;;  %v373_v48 = vld [vmem:[%s980_s3] sm:$0xff] }
  0x17   :  { %v375_v49 = vld [vmem:[%s980_s3 + $0x10] sm:$0xff]  ;;  %597 = vmatprep.mubr.f32.mxu0 %v373_v48  ;;  %v491_v51 = vld [vmem:[%s982_s5 + $0x8] sm:$0xff]  ;;  %v493_v55 = vld [vmem:[%s982_s5 + $0x18] sm:$0xff] }
  0x18   :  { %600 = vmatprep.mubr.f32.mxu1 %v375_v49  ;;  %v28_v61 = vld [vmem:[%s977_s0] sm:$0x3] }
  0x19   :  { %67 = vperm.xlu1 %658, %v33_v3  }
  0x1a   :  { %202 = vperm.xlu0 %656, %v788_v12  }
  0x1d   :  { %72 = vperm.xlu1 %658, %v34_v13  }
  0x1e   :  { %669 = vset.pattern.permute.xlu0 %v705_v7 }
  0x1f   :  { %47 = vperm.xlu0 %669, %v29_v1   ;;  %v916_v1 = vrot.slane %v28_v61, %v127_v60 }
  0x21   :  { %659 = vset.pattern.permute.xlu1 %v704_v2 }
  0x22   :  { %166 = vperm.xlu1 %659, %v34_v13  }
  0x23   :  { %52 = vperm.xlu0 %669, %v30_v4  }
  0x26   :  { %660 = vset.pattern.permute.xlu1 %v705_v7 }
  0x27   :  { %57 = vperm.xlu0 %669, %v31_v0   ;;  %273 = vperm.xlu1 %660, %v247_v14   ;;  %v914_v0 = vrot.slane %v28_v61, %v211_v59 }
  0x2b   :  { %268 = vperm.xlu0 %669, %v246_v15   ;;  %77 = vperm.xlu1 %660, %v35_v5  }
  0x2f   :  { %278 = vperm.xlu0 %669, %v248_v16   ;;  %82 = vperm.xlu1 %660, %v36_v17  }
  0x33   :  { %288 = vperm.xlu0 %669, %v250_v18   ;;  %661 = vset.pattern.permute.xlu1 %v704_v2 }
  0x34   :  { %174 = vperm.xlu1 %661, %v36_v17  }
  0x37   :  { %298 = vperm.xlu0 %669, %v252_v19  }
  0x38   :  { %662 = vset.pattern.permute.xlu1 %v705_v7 }
  0x39   :  { %283 = vperm.xlu1 %662, %v249_v20  }
  0x3b   :  { %308 = vperm.xlu0 %669, %v254_v21  }
  0x3d   :  { %87 = vperm.xlu1 %662, %v37_v8  }
  0x3f   :  { %318 = vperm.xlu0 %669, %v256_v22  }
  0x41   :  { %92 = vperm.xlu1 %662, %v38_v23  }
  0x43   :  { %328 = vperm.xlu0 %669, %v258_v24  }
  0x45   :  { %663 = vset.pattern.permute.xlu1 %v704_v2 }
  0x46   :  { %182 = vperm.xlu1 %663, %v38_v23  }
  0x47   :  { %383 = vperm.xlu0 %669, %v377_v25  }
  0x4a   :  { %664 = vset.pattern.permute.xlu1 %v705_v7 }
  0x4b   :  { %293 = vperm.xlu1 %664, %v251_v26   ;;  %393 = vperm.xlu0 %669, %v379_v27  }
  0x4f   :  { %97 = vperm.xlu1 %664, %v39_v9   ;;  %496 = vperm.xlu0 %669, %v490_v28  }
  0x53   :  { %102 = vperm.xlu1 %664, %v40_v29   ;;  %506 = vperm.xlu0 %669, %v492_v30  }
  0x57   :  { %665 = vset.pattern.permute.xlu1 %v704_v2 }
  0x58   :  { %190 = vperm.xlu1 %665, %v40_v29  }
  0x5c   :  { %666 = vset.pattern.permute.xlu1 %v705_v7 }
  0x5d   :  { %303 = vperm.xlu1 %666, %v253_v31  }
  0x61   :  { %107 = vperm.xlu1 %666, %v781_v11  }
  0x65   :  { %112 = vperm.xlu1 %666, %v42_v32  }
  0x69   :  { %667 = vset.pattern.permute.xlu1 %v704_v2 }
  0x6a   :  { %198 = vperm.xlu1 %667, %v42_v32  }
  0x6e   :  { %668 = vset.pattern.permute.xlu1 %v705_v7 }
  0x6f   :  { %313 = vperm.xlu1 %668, %v255_v33  }
  0x73   :  { %117 = vperm.xlu1 %668, %v788_v12  }
  0x77   :  { %122 = vperm.xlu1 %668, %v44_v34  }
  0x7b   :  { %670 = vset.pattern.permute.xlu1 %v704_v2 }
  0x7c   :  { %206 = vperm.xlu1 %670, %v44_v34  }
  0x80   :  { %671 = vset.pattern.permute.xlu1 %v705_v7 }
  0x81   :  { %323 = vperm.xlu1 %671, %v257_v35   ;;  %v147_v36 = vpop.permute.xlu1 %146  ;;  %v155_v37 = vpop.permute.xlu0 %154 }
  0x82   :  { %v213_v5 = vmul.f32 %v914_v0, %v147_v36  ;;  %v215_v6 = vmul.f32 %v914_v0, %v155_v37 }
  0x85   :  { %333 = vperm.xlu1 %671, %v259_v38   ;;  %v151_v39 = vpop.permute.xlu1 %150  ;;  %v878_v40 = vpop.permute.xlu0 %162 }
  0x86   :  { %v214_v11 = vmul.f32 %v914_v0, %v151_v39  ;;  %v217_v32 = vmul.f32 %v914_v0, %v878_v40 }
  0x89   :  { %338 = vperm.xlu1 %671, %v260_v41   ;;  %v883_v42 = vpop.permute.xlu0 %170 }
  0x8a   :  { %v63_v43 = vpop.permute.xlu1 %62 }
  0x8b   :  { %v132_v19 = vmul.f32 %v916_v1, %v63_v43 }
  0x8d   :  { %388 = vperm.xlu1 %671, %v378_v44   ;;  %v888_v45 = vpop.permute.xlu0 %178 }
  0x8f   :  { %v159_v47 = vpop.permute.xlu1 %158 }
  0x90   :  { %v216_v13 = vmul.f32 %v914_v0, %v159_v47 }
  0x91   :  { %398 = vperm.xlu1 %671, %v380_v46   ;;  %v899_v50 = vpop.permute.xlu0 %186 }
  0x92   :  { %v232_v24 = vadd.f32 %v216_v13, %v132_v19 }
  0x94   :  { %v264_v53 = vpop.permute.xlu1 %263 }
  0x95   :  { %501 = vperm.xlu1 %671, %v491_v51   ;;  %v904_v54 = vpop.permute.xlu0 %194 }
  0x98   :  { %v68_v57 = vpop.permute.xlu1 %67 }
  0x99   :  { %511 = vperm.xlu1 %671, %v493_v55   ;;  %v909_v58 = vpop.permute.xlu0 %202  ;;  %v133_v33 = vmul.f32 %v916_v1, %v68_v57 }
  0x9b   :  { %v233_v41 = vadd.f32 %v217_v32, %v133_v33 }
  0x9c   :  { %v73_v62 = vpop.permute.xlu1 %72 }
  0x9d   :  { %v134_v34 = vmul.f32 %v916_v1, %v73_v62 }
  0x9e   :  { %v48_v63 = vpop.permute.xlu0 %47 }
  0x9f   :  { %v129_v2 = vmul.f32 %v916_v1, %v48_v63 }
  0xa1   :  { %v167_v3 = vpop.permute.xlu1 %166  ;;  %v229_v7 = vadd.f32 %v213_v5, %v129_v2 }
  0xa2   :  { %v53_v4 = vpop.permute.xlu0 %52  ;;  %v218_v29 = vmul.f32 %v914_v0, %v167_v3 }
  0xa3   :  { %v130_v8 = vmul.f32 %v916_v1, %v53_v4  ;;  %v341_v14 = vadd.f32 %v264_v53, %v229_v7  ;;  %v219_v53 = vmul.f32 %v914_v0, %v883_v42 }
  0xa4   :  { %v234_v38 = vadd.f32 %v218_v29, %v134_v34 }
  0xa5   :  { %v230_v16 = vadd.f32 %v214_v11, %v130_v8  ;;  %v357_v22 = vmax.f32 %v341_v14, 0.0  ;;  %v221_v8 = vmul.f32 %v914_v0, %v888_v45 }
  0xa6   :  { %v58_v9 = vpop.permute.xlu0 %57  ;;  %v274_v10 = vpop.permute.xlu1 %273 }
  0xa7   :  { %v131_v12 = vmul.f32 %v916_v1, %v58_v9 }
  0xa9   :  { %v231_v15 = vadd.f32 %v215_v6, %v131_v12 }
  0xaa   :  { %v269_v17 = vpop.permute.xlu0 %268  ;;  %v78_v18 = vpop.permute.xlu1 %77 }
  0xab   :  { %v342_v20 = vadd.f32 %v269_v17, %v230_v16  ;;  %v343_v21 = vadd.f32 %v274_v10, %v231_v15  ;;  %v135_v55 = vmul.f32 %v916_v1, %v78_v18 }
  0xad   :  { %v358_v23 = vmax.f32 %v342_v20, 0.0  ;;  %v359_v30 = vmax.f32 %v343_v21, 0.0  ;;  %v235_v61 = vadd.f32 %v219_v53, %v135_v55 }
  0xae   :  { %v279_v25 = vpop.permute.xlu0 %278  ;;  %v83_v26 = vpop.permute.xlu1 %82 }
  0xaf   :  { %v603_v27 = vpack.c.bf16 %v358_v23, %v357_v22  ;;  %v344_v28 = vadd.f32 %v279_v25, %v232_v24  ;;  %v136_v52 = vmul.f32 %v916_v1, %v83_v26  ;;  %v223_v26 = vmul.f32 %v914_v0, %v899_v50 }
  0xb1   :  { %v360_v31 = vmax.f32 %v344_v28, 0.0  ;;  %604 = vmatprep.subr.bf16.mxu0 %v603_v27  ;;  %635 = vmatprep.subr.bf16.mxu1 %v603_v27 }
  0xb2   :  { %606 = vmatpush3.bf16.msra.mxu0 %v603_v27  ;;  %643 = vmatpush3.bf16.msra.mxu1 %v603_v27  ;;  %v289_v37 = vpop.permute.xlu0 %288 }
  0xb3   :  { %v607_v35 = vpack.c.bf16 %v360_v31, %v359_v30  ;;  %v175_v36 = vpop.permute.xlu1 %174  ;;  %v346_v39 = vadd.f32 %v289_v37, %v234_v38 }
  0xb4   :  { %v220_v51 = vmul.f32 %v914_v0, %v175_v36 }
  0xb5   :  { %608 = vmatprep.subr.bf16.mxu0 %v607_v35  ;;  %636 = vmatprep.subr.bf16.mxu1 %v607_v35  ;;  %v362_v46 = vmax.f32 %v346_v39, 0.0 }
  0xb6   :  { %610 = vmatpush3.bf16.msra.mxu0 %v607_v35  ;;  %644 = vmatpush3.bf16.msra.mxu1 %v607_v35  ;;  %v236_v56 = vadd.f32 %v220_v51, %v136_v52  ;;  %v299_v59 = vpop.permute.xlu0 %298  ;;  %v227_v51 = vmul.f32 %v914_v0, %v909_v58 }
  0xb8   :  { %v284_v43 = vpop.permute.xlu1 %283  ;;  %v348_v60 = vadd.f32 %v299_v59, %v236_v56 }
  0xb9   :  { %v345_v44 = vadd.f32 %v284_v43, %v233_v41  ;;  %v225_v43 = vmul.f32 %v914_v0, %v904_v54 }
  0xba   :  { %v364_v2 = vmax.f32 %v348_v60, 0.0  ;;  %v309_v12 = vpop.permute.xlu0 %308 }
  0xbb   :  { %v361_v47 = vmax.f32 %v345_v44, 0.0 }
  0xbc   :  { %v88_v48 = vpop.permute.xlu1 %87 }
  0xbd   :  { %v611_v40 = vpack.c.bf16 %v362_v46, %v361_v47  ;;  %v137_v9 = vmul.f32 %v916_v1, %v88_v48 }
  0xbe   :  { %v319_v27 = vpop.permute.xlu0 %318 }
  0xbf   :  { %612 = vmatprep.subr.bf16.mxu0 %v611_v40  ;;  %637 = vmatprep.subr.bf16.mxu1 %v611_v40  ;;  %v237_v14 = vadd.f32 %v221_v8, %v137_v9 }
  0xc0   :  { %v93_v49 = vpop.permute.xlu1 %92  ;;  %614 = vmatpush3.bf16.msra.mxu0 %v611_v40  ;;  %645 = vmatpush3.bf16.msra.mxu1 %v611_v40 }
  0xc1   :  { %v138_v7 = vmul.f32 %v916_v1, %v93_v49 }
  0xc2   :  { %v329_v44 = vpop.permute.xlu0 %328 }
  0xc5   :  { %v183_v57 = vpop.permute.xlu1 %182 }
  0xc6   :  { %v222_v42 = vmul.f32 %v914_v0, %v183_v57 }
  0xc8   :  { %v238_v10 = vadd.f32 %v222_v42, %v138_v7 }
  0xca   :  { %v294_v62 = vpop.permute.xlu1 %293  ;;  %v350_v13 = vadd.f32 %v309_v12, %v238_v10 }
  0xcb   :  { %v347_v63 = vadd.f32 %v294_v62, %v235_v61 }
  0xcc   :  { %v366_v17 = vmax.f32 %v350_v13, 0.0 }
  0xcd   :  { %v363_v3 = vmax.f32 %v347_v63, 0.0 }
  0xce   :  { %v98_v4 = vpop.permute.xlu1 %97 }
  0xcf   :  { %v615_v5 = vpack.c.bf16 %v364_v2, %v363_v3  ;;  %v139_v23 = vmul.f32 %v916_v1, %v98_v4  ;;  %v384_v4 = vpop.permute.xlu0 %383 }
  0xd1   :  { %616 = vmatprep.subr.bf16.mxu0 %v615_v5  ;;  %638 = vmatprep.subr.bf16.mxu1 %v615_v5  ;;  %v239_v29 = vadd.f32 %v223_v26, %v139_v23 }
  0xd2   :  { %v103_v6 = vpop.permute.xlu1 %102  ;;  %618 = vmatpush3.bf16.msra.mxu0 %v615_v5  ;;  %646 = vmatpush3.bf16.msra.mxu1 %v615_v5 }
  0xd3   :  { %v140_v22 = vmul.f32 %v916_v1, %v103_v6  ;;  %v394_v6 = vpop.permute.xlu0 %393 }
  0xd7   :  { %v191_v11 = vpop.permute.xlu1 %190 }
  0xd8   :  { %v224_v45 = vmul.f32 %v914_v0, %v191_v11 }
  0xda   :  { %v240_v24 = vadd.f32 %v224_v45, %v140_v22 }
  0xdc   :  { %v304_v15 = vpop.permute.xlu1 %303  ;;  %v352_v28 = vadd.f32 %v319_v27, %v240_v24 }
  0xdd   :  { %v349_v16 = vadd.f32 %v304_v15, %v237_v14  ;;  %v497_v15 = vpop.permute.xlu0 %496 }
  0xde   :  { %v368_v33 = vmax.f32 %v352_v28, 0.0 }
  0xdf   :  { %v365_v18 = vmax.f32 %v349_v16, 0.0 }
  0xe0   :  { %v108_v19 = vpop.permute.xlu1 %107 }
  0xe1   :  { %v619_v20 = vpack.c.bf16 %v366_v17, %v365_v18  ;;  %v141_v50 = vmul.f32 %v916_v1, %v108_v19  ;;  %v507_v22 = vpop.permute.xlu0 %506 }
  0xe3   :  { %620 = vmatprep.subr.bf16.mxu0 %v619_v20  ;;  %639 = vmatprep.subr.bf16.mxu1 %v619_v20  ;;  %v241_v47 = vadd.f32 %v225_v43, %v141_v50 }
  0xe4   :  { %v113_v21 = vpop.permute.xlu1 %112  ;;  %622 = vmatpush3.bf16.msra.mxu0 %v619_v20  ;;  %647 = vmatpush3.bf16.msra.mxu1 %v619_v20 }
  0xe5   :  { %v142_v38 = vmul.f32 %v916_v1, %v113_v21 }
  0xe9   :  { %v199_v25 = vpop.permute.xlu1 %198 }
  0xea   :  { %v226_v37 = vmul.f32 %v914_v0, %v199_v25 }
  0xec   :  { %v242_v39 = vadd.f32 %v226_v37, %v142_v38 }
  0xee   :  { %v314_v30 = vpop.permute.xlu1 %313  ;;  %v354_v46 = vadd.f32 %v329_v44, %v242_v39 }
  0xef   :  { %v351_v31 = vadd.f32 %v314_v30, %v239_v29 }
  0xf0   :  { %v370_v55 = vmax.f32 %v354_v46, 0.0 }
  0xf1   :  { %v367_v32 = vmax.f32 %v351_v31, 0.0 }
  0xf2   :  { %v118_v34 = vpop.permute.xlu1 %117 }
  0xf3   :  { %v623_v35 = vpack.c.bf16 %v368_v33, %v367_v32  ;;  %v143_v40 = vmul.f32 %v916_v1, %v118_v34  ;;  %v528_v34 = vstv %s983_s6 }
  0xf5   :  { %624 = vmatprep.subr.bf16.mxu0 %v623_v35  ;;  %640 = vmatprep.subr.bf16.mxu1 %v623_v35  ;;  %v243_v60 = vadd.f32 %v227_v51, %v143_v40 }
  0xf6   :  { %v123_v36 = vpop.permute.xlu1 %122  ;;  %626 = vmatpush3.bf16.msra.mxu0 %v623_v35  ;;  %648 = vmatpush3.bf16.msra.mxu1 %v623_v35 }
  0xf7   :  { %v144_v57 = vmul.f32 %v916_v1, %v123_v36  ;;  %v376_v1 = vld [vmem:[%s980_s3 + $0x18] sm:$0xff] }
  0xfb   :  { %v207_v41 = vpop.permute.xlu1 %206 }
  0xfc   :  { %v228_v52 = vmul.f32 %v914_v0, %v207_v41  ;;  %v374_v0 = vld [vmem:[%s980_s3 + $0x8] sm:$0xff] }
  0xfe   :  { %v244_v61 = vadd.f32 %v228_v52, %v144_v57 }
 0x100   :  { %v324_v48 = vpop.permute.xlu1 %323 }
 0x101   :  { %v353_v49 = vadd.f32 %v324_v48, %v241_v47 }
 0x103   :  { %v369_v53 = vmax.f32 %v353_v49, 0.0 }
 0x104   :  { %v334_v56 = vpop.permute.xlu1 %333 }
 0x105   :  { %v627_v59 = vpack.c.bf16 %v370_v55, %v369_v53  ;;  %v355_v54 = vadd.f32 %v334_v56, %v243_v60 }
 0x107   :  { %628 = vmatprep.subr.bf16.mxu0 %v627_v59  ;;  %641 = vmatprep.subr.bf16.mxu1 %v627_v59  ;;  %v371_v2 = vmax.f32 %v355_v54, 0.0 }
 0x108   :  { %v339_v62 = vpop.permute.xlu1 %338  ;;  %630 = vmatpush3.bf16.msra.mxu0 %v627_v59  ;;  %649 = vmatpush3.bf16.msra.mxu1 %v627_v59 }
 0x109   :  { %v356_v63 = vadd.f32 %v339_v62, %v244_v61 }
 0x10b   :  { %v372_v3 = vmax.f32 %v356_v63, 0.0 }
 0x10c   :  { %v389_v5 = vpop.permute.xlu1 %388 }
 0x10d   :  { %v631_v58 = vpack.c.bf16 %v372_v3, %v371_v2 }
 0x10f   :  { %632 = vmatprep.subr.bf16.mxu0 %v631_v58  ;;  %642 = vmatprep.subr.bf16.mxu1 %v631_v58 }
 0x110   :  { %634 = vmatpush3.bf16.msra.mxu0 %v631_v58  ;;  %650 = vmatpush3.bf16.msra.mxu1 %v631_v58  ;;  %v399_v11 = vpop.permute.xlu1 %398 }
 0x113   :  { %598 = vmatmul.mubr.f32.vlgmr.msra.gmra.mrb[0].mxu0 %v374_v0  ;;  %601 = vmatmul.mubr.f32.vlgmr.msra.gmra.mrb[0].mxu1 %v376_v1 }
 0x114   :  { %v502_v17 = vpop.permute.xlu1 %501 }
 0x118   :  { %v512_v25 = vpop.permute.xlu1 %511 }
 0x1e6   :  { %v599_v42 = vpop.f32.mrb[0].mxu0  ;;  %v602_v7 = vpop.f32.mrb[0].mxu1 }
 0x1e7   :  { %v473_v8 = vadd.f32 %v599_v42, %v389_v5  ;;  %v467_v9 = vpop.f32.mrb[1].mxu0  ;;  %v477_v10 = vpop.f32.mrb[1].mxu1  ;;  %v483_v14 = vadd.f32 %v602_v7, %v399_v11 }
 0x1e8   :  { %v468_v12 = vadd.f32 %v467_v9, %v384_v4  ;;  %v478_v13 = vadd.f32 %v477_v10, %v394_v6 }
 0x1e9   :  { %672 = vtanh.f32 %v473_v8 }
 0x1ea   :  { %674 = vtanh.f32 %v468_v12 }
 0x1eb   :  { %676 = vtanh.f32 %v478_v13 }
 0x1ec   :  { %678 = vtanh.f32 %v483_v14 }
 0x1f3   :  { %v673_v16 = vpop.eup %672 }
 0x1f4   :  { %v515_v18 = vmul.f32 %v673_v16, %v502_v17  ;;  %v675_v19 = vpop.eup %674 }
 0x1f5   :  { %v677_v20 = vpop.eup %676  ;;  %v514_v21 = vmul.f32 %v675_v19, %v497_v15 }
 0x1f6   :  { %v679_v45 = vpop.eup %678  ;;  %v516_v24 = vmul.f32 %v677_v20, %v507_v22 }
 0x1f7   :  { %v518_v23 = vadd.f32 %v515_v18, %v514_v21  ;;  %v517_v26 = vmul.f32 %v679_v45, %v512_v25 }
 0x1f9   :  { %v519_v27 = vadd.f32 %v518_v23, %v516_v24 }
 0x1fb   :  { %v520_v28 = vadd.f32 %v519_v27, %v517_v26 }
 0x1fd   :  { %v521_v29 = vrot.slane %v520_v28, 4 }
 0x1ff   :  { %v522_v30 = vadd.f32 %v521_v29, %v520_v28 }
 0x201   :  { %v523_v31 = vrot.slane %v522_v30, 2 }
 0x203   :  { %v524_v32 = vadd.f32 %v523_v31, %v522_v30 }
 0x205   :  { %v525_v33 = vrot.slane %v524_v32, 1 }
 0x207   :  { %v526_v35 = vadd.f32 %v525_v33, %v524_v32 }
 0x209   :  { %v529_v36 = vadd.f32 %v528_v34, %v526_v35 }
 0x20b   :  { %530 = vst [vmem:[#allocation3] sm:$0x1] %v529_v36 }
 0x20c   :  { %691 = shalt.err (!%p688_p4)
}
 0x20d   :  { %s692_s24 = scalar_lea.hbm %s984_s7, 16 }
 0x20e   :  { %p693_p5 = scmp.ne.s32.totalorder %s984_s7, %s692_s24  ;;  %p696_p6 = scmp.lt.u32.totalorder %s692_s24, %s984_s7 }
 0x210   :  { %p698_p7 = pnand %p696_p6, %p693_p5 }
 0x212   :  { %701 = shalt.err (!%p698_p7)
}
 0x213   :  { %540 = dma.vmem_to_hbm [thread:$0]  %s538_s19, 16, %s984_s7, [#allocation4]  }
 0x214   :  { %702 = dma.done.wait [#allocation4], 16  }
 0x215   :  { %703 = vsyncadd [#allocation4], 4294967280 }
 0x216   :  { %544 = vsyncpa [#allocation4], 1 }

</bundles_post_ra>
